<compile_context>
chip_gen: v7x
topology: tpu7x:2x2x1
jax: 0.10.0
libtpu: 0.0.40
codegen_flags: <defaults>
</compile_context>

<pallas_src>
import functools

import jax
import jax.numpy as jnp
import numpy as np
from jax.experimental import pallas as pl
from jax.experimental.pallas import tpu as pltpu


def _conv_upsample_rows(x_ref, w_ref, b_ref, r_ref, o_ref, *, row_tile, W, Cout):
    """1x1 conv + nearest-x2 upsample + width pad for `row_tile` input rows.

    x_ref: (1, C, row_tile*W)          flattened NCHW input rows of this tile
    w_ref: (Cout, C)                   1x1 conv weight
    b_ref: (Cout, 1)                   bias
    r_ref: (W, Wf)                     0/1 width-upsample + pad matrix
    o_ref: (1, >=Cout, 2*row_tile, Wf) conv result goes to channels [0:Cout]
    """
    w = w_ref[...]
    b = b_ref[...]
    r = r_ref[...]
    # Channel-major matmul: result minor dim is spatial (lane-dense).
    y = jnp.dot(w, x_ref[0], preferred_element_type=jnp.float32) + b  # (Cout, row_tile*W)
    for t in range(row_tile):                       # small static unrolled loop
        y_t = y[:, t * W:(t + 1) * W]               # (Cout, W)
        # width x2 replication + left/right zero pad via MXU; bias added before
        # R so the padded columns remain exactly zero.
        up = jnp.dot(y_t, r, preferred_element_type=jnp.float32)
        up = up.astype(o_ref.dtype)                 # (Cout, Wf)
        o_ref[0, :Cout, 2 * t, :] = up              # row duplication ==
        o_ref[0, :Cout, 2 * t + 1, :] = up          # nearest x2 in H


def _fused_kernel(x_ref, fm_ref, w_ref, b_ref, r_ref, o_ref, *, row_tile, W, Cout):
    # Fused channel concat: feature_map occupies channels [Cout:2*Cout].
    o_ref[0, Cout:, :, :] = fm_ref[0]
    _conv_upsample_rows(x_ref, w_ref, b_ref, r_ref, o_ref,
                        row_tile=row_tile, W=W, Cout=Cout)


def _conv_only_kernel(x_ref, w_ref, b_ref, r_ref, o_ref, *, row_tile, W, Cout):
    _conv_upsample_rows(x_ref, w_ref, b_ref, r_ref, o_ref,
                        row_tile=row_tile, W=W, Cout=Cout)


def _row_tile_is_legal(t, H, W):
    if H % t:
        return False
    if t == H:
        return True
    return (t * W) % 128 == 0 and (2 * t) % 8 == 0


def _pick_row_tile(H, W, Wf, C, budget_bytes=12 << 20):
    """Largest divisor of H whose blocks are (8,128)-legal and fit the budget."""
    legal = [t for t in range(1, H + 1) if _row_tile_is_legal(t, H, W)]

    def step_bytes(t):  # double-buffered f32 input/output blocks
        x_blk = C * t * W
        fm_blk = (C // 2) * 2 * t * Wf
        out_blk = C * 2 * t * Wf
        return 2 * 4 * (x_blk + fm_blk + out_blk)

    fitting = [t for t in legal if step_bytes(t) <= budget_bytes]
    return max(fitting) if fitting else min(legal)


def upsample_forward(x, feature_map, weight, bias, *, row_tile=None):
    """Pallas implementation of UpSample.forward (NCHW in / NCHW out).

    x:           (N, C, H, W)
    feature_map: (N, C//2, Hf, Wf)
    weight:      (C//2, C, 1, 1)
    bias:        (C//2,)
    returns:     (N, C, Hf, Wf)
    """
    N, C, H, W = x.shape
    Cout = C // 2
    Hf, Wf = feature_map.shape[2], feature_map.shape[3]
    diffY = Hf - 2 * H
    diffX = Wf - 2 * W
    if diffY < 0 or diffX < 0:
        raise ValueError("feature_map must be >= 2x input spatially "
                         "(negative F.pad / crop not supported)")
    pad_top, pad_left = diffY // 2, diffX // 2
    Wp = 2 * W + diffX                     # conv-output width after fused W-pad

    if row_tile is None:
        row_tile = _pick_row_tile(H, W, Wp, C)
    if not _row_tile_is_legal(row_tile, H, W):
        raise ValueError(f"illegal row_tile={row_tile} for H={H}, W={W}")

    # Constant 0/1 matrix: width nearest-x2 upsample + left/right zero pad.
    r_np = np.zeros((W, Wp), np.float32)
    cols = pad_left + 2 * np.arange(W)
    r_np[np.arange(W), cols] = 1.0
    r_np[np.arange(W), cols + 1] = 1.0
    r_mat = jnp.asarray(r_np)

    x_flat = x.reshape(N, C, H * W)        # free contiguous reshape (no transpose)
    w2d = weight.reshape(Cout, C)
    b2d = bias.reshape(Cout, 1)

    grid = (N, H // row_tile)
    x_spec = pl.BlockSpec((1, C, row_tile * W), lambda n, i: (n, 0, i))
    w_spec = pl.BlockSpec((Cout, C), lambda n, i: (0, 0))
    b_spec = pl.BlockSpec((Cout, 1), lambda n, i: (0, 0))
    r_spec = pl.BlockSpec((W, Wp), lambda n, i: (0, 0))
    cparams = pltpu.CompilerParams(
        dimension_semantics=("parallel", "parallel"),
        vmem_limit_bytes=32 * 1024 * 1024)

    if diffY == 0:
        # Fully fused: conv + upsample + W-pad + channel concat -> final output.
        kernel = functools.partial(_fused_kernel, row_tile=row_tile, W=W, Cout=Cout)
        fm_spec = pl.BlockSpec((1, Cout, 2 * row_tile, Wf), lambda n, i: (n, 0, i, 0))
        out_spec = pl.BlockSpec((1, C, 2 * row_tile, Wf), lambda n, i: (n, 0, i, 0))
        return pl.pallas_call(
            kernel,
            out_shape=jax.ShapeDtypeStruct((N, C, Hf, Wf), x.dtype),
            grid_spec=pltpu.PrefetchScalarGridSpec(
                num_scalar_prefetch=0, grid=grid,
                in_specs=[x_spec, fm_spec, w_spec, b_spec, r_spec],
                out_specs=out_spec),
            compiler_params=cparams,
        )(x_flat, feature_map, w2d, b2d, r_mat)

    # General case (diffY > 0): kernel emits the W-padded upsampled conv in its
    # final NCHW row layout; only the diffY-row pad + concat stay in XLA.
    # TODO(synk): fuse the H-pad + concat for diffY != 0 as well (needs an
    # output-row-aligned grid with per-row masking).
    kernel = functools.partial(_conv_only_kernel, row_tile=row_tile, W=W, Cout=Cout)
    out_spec = pl.BlockSpec((1, Cout, 2 * row_tile, Wp), lambda n, i: (n, 0, i, 0))
    up = pl.pallas_call(
        kernel,
        out_shape=jax.ShapeDtypeStruct((N, Cout, 2 * H, Wp), x.dtype),
        grid_spec=pltpu.PrefetchScalarGridSpec(
            num_scalar_prefetch=0, grid=grid,
            in_specs=[x_spec, w_spec, b_spec, r_spec],
            out_specs=out_spec),
        compiler_params=cparams,
    )(x_flat, w2d, b2d, r_mat)
    up = jnp.pad(up, ((0, 0), (0, 0), (pad_top, diffY - pad_top), (0, 0)))
    return jnp.concatenate([up, feature_map], axis=1)


def upsample_reference(x, feature_map, weight, bias):
    """Plain-JAX reference with the literal PyTorch op order (for validation)."""
    N, C, H, W = x.shape
    Cout = C // 2
    up = jnp.repeat(jnp.repeat(x, 2, axis=2), 2, axis=3)        # nearest x2
    w2d = weight.reshape(Cout, C)
    out = jnp.einsum('oc,nchw->nohw', w2d, up) + bias.reshape(1, Cout, 1, 1)
    Hf, Wf = feature_map.shape[2], feature_map.shape[3]
    diffY = Hf - out.shape[2]
    diffX = Wf - out.shape[3]
    out = jnp.pad(out, ((0, 0), (0, 0),
                        (diffY // 2, diffY - diffY // 2),
                        (diffX // 2, diffX - diffX // 2)))
    return jnp.concatenate([out, feature_map], axis=1)


if __name__ == "__main__":
    key = jax.random.PRNGKey(0)
    kx, kf1, kf2, kw, kb = jax.random.split(key, 5)

    N, C, H, W = 2, 4, 16, 16        # channel=4 -> Conv2d(4, 2, 1, 1)
    Cout = C // 2

    x = jax.random.normal(kx, (N, C, H, W), dtype=jnp.float32)
    bound = 1.0 / (C ** 0.5)
    weight = jax.random.uniform(kw, (Cout, C, 1, 1), jnp.float32, -bound, bound)
    bias = jax.random.uniform(kb, (Cout,), jnp.float32, -bound, bound)

    # Case 1: feature_map exactly 2x -> fully fused (conv+upsample+concat) path,
    # multi-step parallel grid (row_tile=8 => grid (2, 2)).
    fm1 = jax.random.normal(kf1, (N, Cout, 2 * H, 2 * W), dtype=jnp.float32)
    out1 = jax.block_until_ready(upsample_forward(x, fm1, weight, bias, row_tile=8))
    ref1 = upsample_reference(x, fm1, weight, bias)
    assert out1.shape == (N, C, 2 * H, 2 * W), out1.shape
    assert out1.dtype == jnp.float32
    assert jnp.allclose(out1, ref1, atol=1e-5, rtol=1e-5), \
        float(jnp.max(jnp.abs(out1 - ref1)))

    # Case 2: feature_map larger -> exercises the fused W-pad + H-pad fallback.
    fm2 = jax.random.normal(kf2, (N, Cout, 2 * H + 4, 2 * W + 6), dtype=jnp.float32)
    out2 = jax.block_until_ready(upsample_forward(x, fm2, weight, bias))
    ref2 = upsample_reference(x, fm2, weight, bias)
    assert out2.shape == (N, C, 2 * H + 4, 2 * W + 6), out2.shape
    assert jnp.allclose(out2, ref2, atol=1e-5, rtol=1e-5), \
        float(jnp.max(jnp.abs(out2 - ref2)))

    print("KERNEL_OK")
</pallas_src>

<mosaic_0001>
module attributes {stable_mosaic.version = 11 : i64} {
  func.func @_fused_kernel(%arg0: i32, %arg1: i32, %arg2: memref<1x4x128xf32, #tpu.memory_space<vmem>>, %arg3: memref<1x2x16x32xf32, #tpu.memory_space<vmem>>, %arg4: memref<2x4xf32, #tpu.memory_space<vmem>>, %arg5: memref<2x1xf32, #tpu.memory_space<vmem>>, %arg6: memref<16x32xf32, #tpu.memory_space<vmem>>, %arg7: memref<1x4x16x32xf32, #tpu.memory_space<vmem>>) attributes {dimension_semantics = [#tpu.dimension_semantics<parallel>, #tpu.dimension_semantics<parallel>], iteration_bounds = array<i64: 2, 2>, scalar_prefetch = 0 : i64, scratch_operands = 0 : i64, tpu.core_type = #tpu.core_type<tc>, window_params = [{transform_indices = @transform_0, window_bounds = array<i64: 1, 4, 128>}, {transform_indices = @transform_1, window_bounds = array<i64: 1, 2, 16, 32>}, {pipeline_mode = #tpu.pipeline_mode<synchronous>, transform_indices = @transform_2, window_bounds = array<i64: 2, 4>}, {pipeline_mode = #tpu.pipeline_mode<synchronous>, transform_indices = @transform_3, window_bounds = array<i64: 2, 1>}, {pipeline_mode = #tpu.pipeline_mode<synchronous>, transform_indices = @transform_4, window_bounds = array<i64: 16, 32>}, {transform_indices = @transform_5, window_bounds = array<i64: 1, 4, 16, 32>}]} {
    %c0 = arith.constant 0 : index
    %c0_0 = arith.constant 0 : index
    %c0_1 = arith.constant 0 : index
    %c0_2 = arith.constant 0 : index
    %0 = vector.load %arg3[%c0, %c0_0, %c0_1, %c0_2] : memref<1x2x16x32xf32, #tpu.memory_space<vmem>>, vector<1x2x16x32xf32>
    %1 = vector.shape_cast %0 : vector<1x2x16x32xf32> to vector<2x16x32xf32>
    %c0_3 = arith.constant 0 : index
    %c2 = arith.constant 2 : index
    %c0_4 = arith.constant 0 : index
    %c0_5 = arith.constant 0 : index
    %2 = vector.load %arg7[%c0_3, %c2, %c0_4, %c0_5] : memref<1x4x16x32xf32, #tpu.memory_space<vmem>>, vector<1x2x16x32xf32>
    %3 = vector.shape_cast %2 : vector<1x2x16x32xf32> to vector<2x16x32xf32>
    %4 = vector.shape_cast %1 : vector<2x16x32xf32> to vector<1x2x16x32xf32>
    tpu.vector_store %arg7[%c0_3, %c2, %c0_4, %c0_5], %4 {strides = array<i32>} : memref<1x4x16x32xf32, #tpu.memory_space<vmem>>, vector<1x2x16x32xf32>,
    %c0_6 = arith.constant 0 : index
    %c0_7 = arith.constant 0 : index
    %5 = vector.load %arg4[%c0_6, %c0_7] : memref<2x4xf32, #tpu.memory_space<vmem>>, vector<2x4xf32>
    %c0_8 = arith.constant 0 : index
    %c0_9 = arith.constant 0 : index
    %6 = vector.load %arg5[%c0_8, %c0_9] : memref<2x1xf32, #tpu.memory_space<vmem>>, vector<2x1xf32>
    %c0_10 = arith.constant 0 : index
    %c0_11 = arith.constant 0 : index
    %7 = vector.load %arg6[%c0_10, %c0_11] : memref<16x32xf32, #tpu.memory_space<vmem>>, vector<16x32xf32>
    %c0_12 = arith.constant 0 : index
    %c0_13 = arith.constant 0 : index
    %c0_14 = arith.constant 0 : index
    %8 = vector.load %arg2[%c0_12, %c0_13, %c0_14] : memref<1x4x128xf32, #tpu.memory_space<vmem>>, vector<1x4x128xf32>
    %9 = vector.shape_cast %8 : vector<1x4x128xf32> to vector<4x128xf32>
    %cst = arith.constant dense<0.000000e+00> : vector<2x128xf32>
    %10 = tpu.matmul %5, %9, %cst {dimension_numbers = #tpu.dot_dimension_numbers<[1], [0], [0], [1], [0, 0, 1, 1], [], []>} : vector<2x4xf32>, vector<4x128xf32>, vector<2x128xf32> -> vector<2x128xf32>
    %11 = vector.broadcast %6 : vector<2x1xf32> to vector<2x128xf32>
    %12 = arith.addf %10, %11 : vector<2x128xf32>
    %13 = vector.extract_strided_slice %12 {offsets = [0, 0], sizes = [2, 16], strides = [1, 1]} : vector<2x128xf32> to vector<2x16xf32>
    %cst_15 = arith.constant dense<0.000000e+00> : vector<2x32xf32>
    %14 = tpu.matmul %13, %7, %cst_15 {dimension_numbers = #tpu.dot_dimension_numbers<[1], [0], [0], [1], [0, 0, 1, 1], [], []>} : vector<2x16xf32>, vector<16x32xf32>, vector<2x32xf32> -> vector<2x32xf32>
    %c0_16 = arith.constant 0 : index
    %c0_17 = arith.constant 0 : index
    %c0_18 = arith.constant 0 : index
    %c0_19 = arith.constant 0 : index
    %15 = vector.load %arg7[%c0_16, %c0_17, %c0_18, %c0_19] : memref<1x4x16x32xf32, #tpu.memory_space<vmem>>, vector<1x2x1x32xf32>
    %16 = vector.shape_cast %15 : vector<1x2x1x32xf32> to vector<2x32xf32>
    %17 = vector.shape_cast %14 : vector<2x32xf32> to vector<1x2x1x32xf32>
    tpu.vector_store %arg7[%c0_16, %c0_17, %c0_18, %c0_19], %17 {strides = array<i32>} : memref<1x4x16x32xf32, #tpu.memory_space<vmem>>, vector<1x2x1x32xf32>,
    %c0_20 = arith.constant 0 : index
    %c0_21 = arith.constant 0 : index
    %c1 = arith.constant 1 : index
    %c0_22 = arith.constant 0 : index
    %18 = vector.load %arg7[%c0_20, %c0_21, %c1, %c0_22] : memref<1x4x16x32xf32, #tpu.memory_space<vmem>>, vector<1x2x1x32xf32>
    %19 = vector.shape_cast %18 : vector<1x2x1x32xf32> to vector<2x32xf32>
    %20 = vector.shape_cast %14 : vector<2x32xf32> to vector<1x2x1x32xf32>
    tpu.vector_store %arg7[%c0_20, %c0_21, %c1, %c0_22], %20 {strides = array<i32>} : memref<1x4x16x32xf32, #tpu.memory_space<vmem>>, vector<1x2x1x32xf32>,
    %21 = vector.extract_strided_slice %12 {offsets = [0, 16], sizes = [2, 16], strides = [1, 1]} : vector<2x128xf32> to vector<2x16xf32>
    %cst_23 = arith.constant dense<0.000000e+00> : vector<2x32xf32>
    %22 = tpu.matmul %21, %7, %cst_23 {dimension_numbers = #tpu.dot_dimension_numbers<[1], [0], [0], [1], [0, 0, 1, 1], [], []>} : vector<2x16xf32>, vector<16x32xf32>, vector<2x32xf32> -> vector<2x32xf32>
    %c0_24 = arith.constant 0 : index
    %c0_25 = arith.constant 0 : index
    %c2_26 = arith.constant 2 : index
    %c0_27 = arith.constant 0 : index
    %23 = vector.load %arg7[%c0_24, %c0_25, %c2_26, %c0_27] : memref<1x4x16x32xf32, #tpu.memory_space<vmem>>, vector<1x2x1x32xf32>
    %24 = vector.shape_cast %23 : vector<1x2x1x32xf32> to vector<2x32xf32>
    %25 = vector.shape_cast %22 : vector<2x32xf32> to vector<1x2x1x32xf32>
    tpu.vector_store %arg7[%c0_24, %c0_25, %c2_26, %c0_27], %25 {strides = array<i32>} : memref<1x4x16x32xf32, #tpu.memory_space<vmem>>, vector<1x2x1x32xf32>,
    %c0_28 = arith.constant 0 : index
    %c0_29 = arith.constant 0 : index
    %c3 = arith.constant 3 : index
    %c0_30 = arith.constant 0 : index
    %26 = vector.load %arg7[%c0_28, %c0_29, %c3, %c0_30] : memref<1x4x16x32xf32, #tpu.memory_space<vmem>>, vector<1x2x1x32xf32>
    %27 = vector.shape_cast %26 : vector<1x2x1x32xf32> to vector<2x32xf32>
    %28 = vector.shape_cast %22 : vector<2x32xf32> to vector<1x2x1x32xf32>
    tpu.vector_store %arg7[%c0_28, %c0_29, %c3, %c0_30], %28 {strides = array<i32>} : memref<1x4x16x32xf32, #tpu.memory_space<vmem>>, vector<1x2x1x32xf32>,
    %29 = vector.extract_strided_slice %12 {offsets = [0, 32], sizes = [2, 16], strides = [1, 1]} : vector<2x128xf32> to vector<2x16xf32>
    %cst_31 = arith.constant dense<0.000000e+00> : vector<2x32xf32>
    %30 = tpu.matmul %29, %7, %cst_31 {dimension_numbers = #tpu.dot_dimension_numbers<[1], [0], [0], [1], [0, 0, 1, 1], [], []>} : vector<2x16xf32>, vector<16x32xf32>, vector<2x32xf32> -> vector<2x32xf32>
    %c0_32 = arith.constant 0 : index
    %c0_33 = arith.constant 0 : index
    %c4 = arith.constant 4 : index
    %c0_34 = arith.constant 0 : index
    %31 = vector.load %arg7[%c0_32, %c0_33, %c4, %c0_34] : memref<1x4x16x32xf32, #tpu.memory_space<vmem>>, vector<1x2x1x32xf32>
    %32 = vector.shape_cast %31 : vector<1x2x1x32xf32> to vector<2x32xf32>
    %33 = vector.shape_cast %30 : vector<2x32xf32> to vector<1x2x1x32xf32>
    tpu.vector_store %arg7[%c0_32, %c0_33, %c4, %c0_34], %33 {strides = array<i32>} : memref<1x4x16x32xf32, #tpu.memory_space<vmem>>, vector<1x2x1x32xf32>,
    %c0_35 = arith.constant 0 : index
    %c0_36 = arith.constant 0 : index
    %c5 = arith.constant 5 : index
    %c0_37 = arith.constant 0 : index
    %34 = vector.load %arg7[%c0_35, %c0_36, %c5, %c0_37] : memref<1x4x16x32xf32, #tpu.memory_space<vmem>>, vector<1x2x1x32xf32>
    %35 = vector.shape_cast %34 : vector<1x2x1x32xf32> to vector<2x32xf32>
    %36 = vector.shape_cast %30 : vector<2x32xf32> to vector<1x2x1x32xf32>
    tpu.vector_store %arg7[%c0_35, %c0_36, %c5, %c0_37], %36 {strides = array<i32>} : memref<1x4x16x32xf32, #tpu.memory_space<vmem>>, vector<1x2x1x32xf32>,
    %37 = vector.extract_strided_slice %12 {offsets = [0, 48], sizes = [2, 16], strides = [1, 1]} : vector<2x128xf32> to vector<2x16xf32>
    %cst_38 = arith.constant dense<0.000000e+00> : vector<2x32xf32>
    %38 = tpu.matmul %37, %7, %cst_38 {dimension_numbers = #tpu.dot_dimension_numbers<[1], [0], [0], [1], [0, 0, 1, 1], [], []>} : vector<2x16xf32>, vector<16x32xf32>, vector<2x32xf32> -> vector<2x32xf32>
    %c0_39 = arith.constant 0 : index
    %c0_40 = arith.constant 0 : index
    %c6 = arith.constant 6 : index
    %c0_41 = arith.constant 0 : index
    %39 = vector.load %arg7[%c0_39, %c0_40, %c6, %c0_41] : memref<1x4x16x32xf32, #tpu.memory_space<vmem>>, vector<1x2x1x32xf32>
    %40 = vector.shape_cast %39 : vector<1x2x1x32xf32> to vector<2x32xf32>
    %41 = vector.shape_cast %38 : vector<2x32xf32> to vector<1x2x1x32xf32>
    tpu.vector_store %arg7[%c0_39, %c0_40, %c6, %c0_41], %41 {strides = array<i32>} : memref<1x4x16x32xf32, #tpu.memory_space<vmem>>, vector<1x2x1x32xf32>,
    %c0_42 = arith.constant 0 : index
    %c0_43 = arith.constant 0 : index
    %c7 = arith.constant 7 : index
    %c0_44 = arith.constant 0 : index
    %42 = vector.load %arg7[%c0_42, %c0_43, %c7, %c0_44] : memref<1x4x16x32xf32, #tpu.memory_space<vmem>>, vector<1x2x1x32xf32>
    %43 = vector.shape_cast %42 : vector<1x2x1x32xf32> to vector<2x32xf32>
    %44 = vector.shape_cast %38 : vector<2x32xf32> to vector<1x2x1x32xf32>
    tpu.vector_store %arg7[%c0_42, %c0_43, %c7, %c0_44], %44 {strides = array<i32>} : memref<1x4x16x32xf32, #tpu.memory_space<vmem>>, vector<1x2x1x32xf32>,
    %45 = vector.extract_strided_slice %12 {offsets = [0, 64], sizes = [2, 16], strides = [1, 1]} : vector<2x128xf32> to vector<2x16xf32>
    %cst_45 = arith.constant dense<0.000000e+00> : vector<2x32xf32>
    %46 = tpu.matmul %45, %7, %cst_45 {dimension_numbers = #tpu.dot_dimension_numbers<[1], [0], [0], [1], [0, 0, 1, 1], [], []>} : vector<2x16xf32>, vector<16x32xf32>, vector<2x32xf32> -> vector<2x32xf32>
    %c0_46 = arith.constant 0 : index
    %c0_47 = arith.constant 0 : index
    %c8 = arith.constant 8 : index
    %c0_48 = arith.constant 0 : index
    %47 = vector.load %arg7[%c0_46, %c0_47, %c8, %c0_48] : memref<1x4x16x32xf32, #tpu.memory_space<vmem>>, vector<1x2x1x32xf32>
    %48 = vector.shape_cast %47 : vector<1x2x1x32xf32> to vector<2x32xf32>
    %49 = vector.shape_cast %46 : vector<2x32xf32> to vector<1x2x1x32xf32>
    tpu.vector_store %arg7[%c0_46, %c0_47, %c8, %c0_48], %49 {strides = array<i32>} : memref<1x4x16x32xf32, #tpu.memory_space<vmem>>, vector<1x2x1x32xf32>,
    %c0_49 = arith.constant 0 : index
    %c0_50 = arith.constant 0 : index
    %c9 = arith.constant 9 : index
    %c0_51 = arith.constant 0 : index
    %50 = vector.load %arg7[%c0_49, %c0_50, %c9, %c0_51] : memref<1x4x16x32xf32, #tpu.memory_space<vmem>>, vector<1x2x1x32xf32>
    %51 = vector.shape_cast %50 : vector<1x2x1x32xf32> to vector<2x32xf32>
    %52 = vector.shape_cast %46 : vector<2x32xf32> to vector<1x2x1x32xf32>
    tpu.vector_store %arg7[%c0_49, %c0_50, %c9, %c0_51], %52 {strides = array<i32>} : memref<1x4x16x32xf32, #tpu.memory_space<vmem>>, vector<1x2x1x32xf32>,
    %53 = vector.extract_strided_slice %12 {offsets = [0, 80], sizes = [2, 16], strides = [1, 1]} : vector<2x128xf32> to vector<2x16xf32>
    %cst_52 = arith.constant dense<0.000000e+00> : vector<2x32xf32>
    %54 = tpu.matmul %53, %7, %cst_52 {dimension_numbers = #tpu.dot_dimension_numbers<[1], [0], [0], [1], [0, 0, 1, 1], [], []>} : vector<2x16xf32>, vector<16x32xf32>, vector<2x32xf32> -> vector<2x32xf32>
    %c0_53 = arith.constant 0 : index
    %c0_54 = arith.constant 0 : index
    %c10 = arith.constant 10 : index
    %c0_55 = arith.constant 0 : index
    %55 = vector.load %arg7[%c0_53, %c0_54, %c10, %c0_55] : memref<1x4x16x32xf32, #tpu.memory_space<vmem>>, vector<1x2x1x32xf32>
    %56 = vector.shape_cast %55 : vector<1x2x1x32xf32> to vector<2x32xf32>
    %57 = vector.shape_cast %54 : vector<2x32xf32> to vector<1x2x1x32xf32>
    tpu.vector_store %arg7[%c0_53, %c0_54, %c10, %c0_55], %57 {strides = array<i32>} : memref<1x4x16x32xf32, #tpu.memory_space<vmem>>, vector<1x2x1x32xf32>,
    %c0_56 = arith.constant 0 : index
    %c0_57 = arith.constant 0 : index
    %c11 = arith.constant 11 : index
    %c0_58 = arith.constant 0 : index
    %58 = vector.load %arg7[%c0_56, %c0_57, %c11, %c0_58] : memref<1x4x16x32xf32, #tpu.memory_space<vmem>>, vector<1x2x1x32xf32>
    %59 = vector.shape_cast %58 : vector<1x2x1x32xf32> to vector<2x32xf32>
    %60 = vector.shape_cast %54 : vector<2x32xf32> to vector<1x2x1x32xf32>
    tpu.vector_store %arg7[%c0_56, %c0_57, %c11, %c0_58], %60 {strides = array<i32>} : memref<1x4x16x32xf32, #tpu.memory_space<vmem>>, vector<1x2x1x32xf32>,
    %61 = vector.extract_strided_slice %12 {offsets = [0, 96], sizes = [2, 16], strides = [1, 1]} : vector<2x128xf32> to vector<2x16xf32>
    %cst_59 = arith.constant dense<0.000000e+00> : vector<2x32xf32>
    %62 = tpu.matmul %61, %7, %cst_59 {dimension_numbers = #tpu.dot_dimension_numbers<[1], [0], [0], [1], [0, 0, 1, 1], [], []>} : vector<2x16xf32>, vector<16x32xf32>, vector<2x32xf32> -> vector<2x32xf32>
    %c0_60 = arith.constant 0 : index
    %c0_61 = arith.constant 0 : index
    %c12 = arith.constant 12 : index
    %c0_62 = arith.constant 0 : index
    %63 = vector.load %arg7[%c0_60, %c0_61, %c12, %c0_62] : memref<1x4x16x32xf32, #tpu.memory_space<vmem>>, vector<1x2x1x32xf32>
    %64 = vector.shape_cast %63 : vector<1x2x1x32xf32> to vector<2x32xf32>
    %65 = vector.shape_cast %62 : vector<2x32xf32> to vector<1x2x1x32xf32>
    tpu.vector_store %arg7[%c0_60, %c0_61, %c12, %c0_62], %65 {strides = array<i32>} : memref<1x4x16x32xf32, #tpu.memory_space<vmem>>, vector<1x2x1x32xf32>,
    %c0_63 = arith.constant 0 : index
    %c0_64 = arith.constant 0 : index
    %c13 = arith.constant 13 : index
    %c0_65 = arith.constant 0 : index
    %66 = vector.load %arg7[%c0_63, %c0_64, %c13, %c0_65] : memref<1x4x16x32xf32, #tpu.memory_space<vmem>>, vector<1x2x1x32xf32>
    %67 = vector.shape_cast %66 : vector<1x2x1x32xf32> to vector<2x32xf32>
    %68 = vector.shape_cast %62 : vector<2x32xf32> to vector<1x2x1x32xf32>
    tpu.vector_store %arg7[%c0_63, %c0_64, %c13, %c0_65], %68 {strides = array<i32>} : memref<1x4x16x32xf32, #tpu.memory_space<vmem>>, vector<1x2x1x32xf32>,
    %69 = vector.extract_strided_slice %12 {offsets = [0, 112], sizes = [2, 16], strides = [1, 1]} : vector<2x128xf32> to vector<2x16xf32>
    %cst_66 = arith.constant dense<0.000000e+00> : vector<2x32xf32>
    %70 = tpu.matmul %69, %7, %cst_66 {dimension_numbers = #tpu.dot_dimension_numbers<[1], [0], [0], [1], [0, 0, 1, 1], [], []>} : vector<2x16xf32>, vector<16x32xf32>, vector<2x32xf32> -> vector<2x32xf32>
    %c0_67 = arith.constant 0 : index
    %c0_68 = arith.constant 0 : index
    %c14 = arith.constant 14 : index
    %c0_69 = arith.constant 0 : index
    %71 = vector.load %arg7[%c0_67, %c0_68, %c14, %c0_69] : memref<1x4x16x32xf32, #tpu.memory_space<vmem>>, vector<1x2x1x32xf32>
    %72 = vector.shape_cast %71 : vector<1x2x1x32xf32> to vector<2x32xf32>
    %73 = vector.shape_cast %70 : vector<2x32xf32> to vector<1x2x1x32xf32>
    tpu.vector_store %arg7[%c0_67, %c0_68, %c14, %c0_69], %73 {strides = array<i32>} : memref<1x4x16x32xf32, #tpu.memory_space<vmem>>, vector<1x2x1x32xf32>,
    %c0_70 = arith.constant 0 : index
    %c0_71 = arith.constant 0 : index
    %c15 = arith.constant 15 : index
    %c0_72 = arith.constant 0 : index
    %74 = vector.load %arg7[%c0_70, %c0_71, %c15, %c0_72] : memref<1x4x16x32xf32, #tpu.memory_space<vmem>>, vector<1x2x1x32xf32>
    %75 = vector.shape_cast %74 : vector<1x2x1x32xf32> to vector<2x32xf32>
    %76 = vector.shape_cast %70 : vector<2x32xf32> to vector<1x2x1x32xf32>
    tpu.vector_store %arg7[%c0_70, %c0_71, %c15, %c0_72], %76 {strides = array<i32>} : memref<1x4x16x32xf32, #tpu.memory_space<vmem>>, vector<1x2x1x32xf32>,
    return
  }
  func.func @transform_0(%arg0: i32, %arg1: i32) -> (i32, i32, i32) {
    %c0_i32 = arith.constant 0 : i32
    %c0_i32_0 = arith.constant 0 : i32
    return %arg0, %c0_i32, %arg1 : i32, i32, i32
  }
  func.func @transform_1(%arg0: i32, %arg1: i32) -> (i32, i32, i32, i32) {
    %c0_i32 = arith.constant 0 : i32
    %c0_i32_0 = arith.constant 0 : i32
    %c0_i32_1 = arith.constant 0 : i32
    return %arg0, %c0_i32, %arg1, %c0_i32_0 : i32, i32, i32, i32
  }
  func.func @transform_2(%arg0: i32, %arg1: i32) -> (i32, i32) {
    %c0_i32 = arith.constant 0 : i32
    %c0_i32_0 = arith.constant 0 : i32
    %c0_i32_1 = arith.constant 0 : i32
    return %c0_i32, %c0_i32_0 : i32, i32
  }
  func.func @transform_3(%arg0: i32, %arg1: i32) -> (i32, i32) {
    %c0_i32 = arith.constant 0 : i32
    %c0_i32_0 = arith.constant 0 : i32
    %c0_i32_1 = arith.constant 0 : i32
    return %c0_i32, %c0_i32_0 : i32, i32
  }
  func.func @transform_4(%arg0: i32, %arg1: i32) -> (i32, i32) {
    %c0_i32 = arith.constant 0 : i32
    %c0_i32_0 = arith.constant 0 : i32
    %c0_i32_1 = arith.constant 0 : i32
    return %c0_i32, %c0_i32_0 : i32, i32
  }
  func.func @transform_5(%arg0: i32, %arg1: i32) -> (i32, i32, i32, i32) {
    %c0_i32 = arith.constant 0 : i32
    %c0_i32_0 = arith.constant 0 : i32
    %c0_i32_1 = arith.constant 0 : i32
    return %arg0, %c0_i32, %arg1, %c0_i32_0 : i32, i32, i32, i32
  }
}

</mosaic_0001>

<bundles_post_ra>
// kernel: tpu_custom_call.1
= control target key start
LH: loop header
LB: loop body
LE: loop exit
PB: predicated region body
PF: predicated region fallthrough
CT: control target
= control target key end

     0   :  { %s2175_s0 = inlined_call_operand.hbm [shape: f32[2,4,256], index: 0, kind: input, shape index: {}]   ;;  %s2176_s1 = inlined_call_operand.hbm [shape: f32[2,2,32,32], index: 1, kind: input, shape index: {}]   ;;  %s2177_s2 = inlined_call_operand.vmem [shape: f32[2,4], index: 2, kind: input, shape index: {}]   ;;  %s2178_s3 = inlined_call_operand.vmem [shape: f32[2,1], index: 3, kind: input, shape index: {}]   ;;  %s2179_s4 = inlined_call_operand.vmem [shape: f32[16,32], index: 4, kind: input, shape index: {}]   ;;  %s2180_s5 = inlined_call_operand.hbm [shape: f32[2,4,32,32], index: 5, kind: output, shape index: {}]  }
   0x1   :  { %2185 = sst [smem:[#allocation19_spill]] %s2175_s0 }
   0x2   :  { %10 = vsyncpa [#allocation3], 0 }
   0x3   :  { %12 = vsyncpa [#allocation3 + $0x1], 0 }
   0x4   :  { %13 = vsyncpa [#allocation6], 0 }
   0x5   :  { %15 = vsyncpa [#allocation6 + $0x1], 0 }
   0x6   :  { %16 = vsyncpa [#allocation4], 0 }
   0x7   :  { %18 = vsyncpa [#allocation4 + $0x1], 0  ;;  %s1834_s18 = smov 0   ;;  %s1836_s19 = smov 0  }
   0x8   :  { %s1838_s20 = smov 0   ;;  %s1840_s21 = smov 0  }
   0x9   :  { %s1842_s22 = smov 0   ;;  %s1844_s23 = smov 0  }
   0xa   :  { %s1846_s24 = smov 0   ;;  %s1848_s25 = smov 0  }
   0xb LB: > { %s1412_s26 = sadd.s32 4294967295, %s1776_s25   ;;  %s1413_s27 = sadd.s32 4294967294, %s1776_s25   ;;  %s1776_s25 = sphi %s1848_s25, %s24_s25   ;;  %s1772_s24 = sphi %s1846_s24, %s2206_s24   ;;  %s1768_s23 = sphi %s1844_s23, %s2205_s23   ;;  %s1764_s22 = sphi %s1842_s22, %s2204_s22   ;;  %s1760_s21 = sphi %s1840_s21, %s2203_s21   ;;  %s1756_s20 = sphi %s1838_s20, %s2202_s20   ;;  %s1752_s19 = sphi %s1836_s19, %s2201_s19   ;;  %s1748_s18 = sphi %s1834_s18, %s2200_s18  }
   0xc   : > { %s33_s28 = sadd.s32 1, %s1768_s23  ;;  %s36_s29 = sadd.s32 1, %s1772_s24 }
   0xd   : > { %p34_p0 = scmp.ge.s32.totalorder %s33_s28, 2  ;;  %p52_p1 = scmp.ne.s32.totalorder %s1756_s20, %s1752_s19 }
   0xe   : > { %p53_p2 = scmp.eq.s32.totalorder %s1776_s25, 0  ;;  %p58_p5 = scmp.ne.s32.totalorder %s1752_s19, %s1748_s18 }
   0xf   : > { %s2208_s28 = smov (%p34_p0, %s33_s28), 0  ;;  %s2210_s29 = smov (!%p34_p0, %s36_s29), %s1772_s24 }
  0x10   : > { %2186 = sst [smem:[#allocation16_spill]] %s2208_s28  ;;  %s41_s30 = ssub.s32 %s1768_s23, %s2208_s28 }
  0x11   : > { %p1886_p3 = por %p53_p2, %p52_p1  ;;  %p38_p4 = scmp.ge.s32.totalorder %s2210_s29, 2 }
  0x12   : > { %p59_p6 = scmp.eq.s32.totalorder %s1412_s26, 0  ;;  %p175_p7 = scmp.eq.s32.totalorder %s1412_s26, 3 }
  0x13   : > { %s2212_s29 = smov (%p38_p4, %s2210_s29), 0  ;;  %p181_p10 = scmp.eq.s32.totalorder %s1413_s27, 3 }
  0x14   : > { %2188 = sst [smem:[#allocation17_spill]] %s2212_s29  ;;  %p1894_p8 = por %p59_p6, %p58_p5 }
  0x15   : > { %p1898_p9 = por %p175_p7, %p52_p1  ;;  %s40_s9 = ssub.s32 %s1772_s24, %s2212_s29 }
  0x16   : > { %s2189_s7 = scalar_select %p1894_p8, 1, 0 }
  0x17   : > { %s2190_s8 = scalar_select %p1898_p9, 1, 0 }
  0x18   : > { %s42_s10 = sor.u32 %s41_s30, %s40_s9  ;;  %s45_s11 = sadd.s32 1, %s1756_s20 }
  0x19   : > { %p43_p11 = scmp.eq.s32.totalorder %s42_s10, 0  ;;  %p1905_p12 = por %p181_p10, %p58_p5 }
  0x1a   : > { %p1415_p13 = scmp.ge.s32.totalorder %s1776_s25, 4 }
  0x1b   : > { %s2191_s12 = scalar_select %p1905_p12, 1, 0 }
  0x1c   : > { %s1910_s13 = scalar_select %p43_p11, %s1756_s20, %s45_s11  }
  0x1d   : > { %206 = sbr.rel (%p1415_p13) target bundleno = 77 (0x4d), region = 28  ;;  %s1914_s14 = sand.u32 (!%p1415_p13), 1, %s1756_s20  }
  0x1e   : > { %2192 = sst [smem:[#allocation18_spill]] %s1910_s13  ;;  %s1417_s15 = sshll.u32 (!%p1415_p13), %s1772_s24, 1 }
  0x1f   : > { %s1416_s16 = sshll.u32 (!%p1415_p13), %s1914_s14, 2  ;;  %s219_s17 = sadd.s32 (!%p1415_p13), %s1768_s23, %s1417_s15 }
  0x20   : > { %s1418_s26 = sshll.u32 (!%p1415_p13), %s219_s17, 6  ;;  %s214_s27 = scalar_lea.vmem (!%p1415_p13), [#allocation2], %s1416_s16 }
  0x21   : > { %s223_s30 = sshll.u32 (!%p1415_p13), %s214_s27, 4  ;;  %s2193_s0 = sld [smem:[#allocation19_spill]] (!%p1415_p13)  ;;  %s224_s30 = int_to_ptr.vmem [resolvable:$true] %s223_s30 }
  0x22   : > { %s211_s29 = scalar_lea.sflag (!%p1415_p13), [#allocation3], %s1914_s14 }
  0x27   : > { %s1922_s11 = scalar_lea.hbm %s2193_s0, %s1418_s26  ;;  %s1678_s16 = scalar_lea.hbm %s2193_s0, 256 }
  0x28   : > { %s1674_s28 = scalar_lea.hbm %s1922_s11, 64  ;;  %p1679_p4 = scmp.lt.u32.totalorder %s1922_s11, %s2193_s0 }
  0x29   : > { %p1675_p0 = scmp.ne.s32.totalorder %s1922_s11, %s1674_s28  ;;  %p1680_p5 = scmp.lt.u32.totalorder %s1678_s16, %s1674_s28 }
  0x2a   : > { %p1682_p7 = scmp.lt.u32.totalorder %s1674_s28, %s1922_s11 }
  0x2b   : > { %p1676_p1 = pnand %p1675_p0, %p1886_p3  ;;  %p1681_p6 = por %p1680_p5, %p1679_p4 }
  0x2d   : > { %p1677_p2 = pneg %p1676_p1  ;;  %p1683_p10 = por %p1682_p7, %p1681_p6 }
  0x2f   : > { %p1684_p11 = pnand %p1683_p10, %p1677_p2 }
  0x31   : > { %1687 = shalt.err (!%p1684_p11)
}
  0x32   : > { %s1688_s26 = scalar_lea.vmem %s224_s30, 64  ;;  %s1778_s9 = smov [#allocation2]  }
  0x33   : > { %p1689_p13 = scmp.ne.s32.totalorder %s224_s30, %s1688_s26  ;;  %s1692_s10 = sshll.u32 %s1778_s9, 4  ;;  %s1693_s10 = int_to_ptr.vmem [resolvable:$false] %s1692_s10 }
  0x34   : > { %s1694_s15 = scalar_lea.vmem %s1693_s10, 128  ;;  %p1695_p12 = scmp.lt.s32.totalorder %s224_s30, %s1693_s10 }
  0x35   : > { %p1690_p0 = pnand %p1689_p13, %p1886_p3  ;;  %p1696_p9 = scmp.lt.s32.totalorder %s1694_s15, %s1688_s26 }
  0x37   : > { %p1691_p1 = pneg %p1690_p0  ;;  %p1697_p8 = por %p1696_p9, %p1695_p12 }
  0x39   : > { %p1698_p4 = pnand %p1697_p8, %p1691_p1 }
  0x3b   : > { %1701 = shalt.err (!%p1698_p4)
}
  0x3c   : > { %1560 = dma.hbm_to_vmem [thread:$0]  (%p1886_p3), %s1922_s11, 64, %s224_s30, %s211_s29  }
  0x3d   : > { %s1419_s28 = sshll.u32 %s1914_s14, 5  ;;  %s1420_s13 = sshll.u32 %s1768_s23, 1 }
  0x3e   : > { %s1421_s17 = sshll.u32 %s1772_s24, 3  ;;  %s234_s27 = scalar_lea.vmem [#allocation5], %s1419_s28 }
  0x3f   : > { %s240_s16 = sadd.s32 %s1421_s17, %s1420_s13  ;;  %s255_s26 = sshll.u32 %s234_s27, 4  ;;  %s256_s26 = int_to_ptr.vmem [resolvable:$true] %s255_s26 }
  0x40   : > { %s1422_s9 = sshll.u32 %s240_s16, 7  ;;  %s1779_s10 = smov 512  }
  0x41   : > { %1562 = sst [smem:[#allocation9]] (%p1886_p3), %s1779_s10  ;;  %s1780_s11 = smov 256  }
  0x42   : > { %s1561_s29 = scalar_select %p1886_p3, [#allocation0], [#allocation12] }
  0x43   : > { %1563 = sst [smem:[#allocation9 + $0x1]] (%p1886_p3), %s1780_s11  ;;  %s1781_s15 = smov 2  }
  0x44   : > { %s247_s30 = sld [smem:[%s1561_s29]]   ;;  %s1782_s0 = smov 128  }
  0x45   : > { %1564 = sst [smem:[#allocation9 + $0x2]] (%p1886_p3), %s1781_s15  ;;  %s1783_s28 = smov 8  }
  0x46   : > { %1565 = sst [smem:[#allocation9 + $0x3]] (%p1886_p3), %s1782_s0  ;;  %s242_s16 = scalar_lea.hbm %s2176_s1, %s1422_s9 }
  0x47   : > { %1566 = sst [smem:[#allocation9 + $0x4]] (%p1886_p3), %s1782_s0  ;;  %s231_s29 = scalar_lea.sflag [#allocation6], %s1914_s14 }
  0x48   : > { %1567 = sst [smem:[#allocation9 + $0x5]] (%p1886_p3), %s1783_s28  ;;  %s1784_s11 = smov [#allocation8]  }
  0x4a   : > { %s1423_s27 = sshll.u32 %s247_s30, 26 }
  0x4b   : > { %s1424_s10 = sadd.s32 134217728, %s1423_s27 }
  0x4c   : > { %1568 = dma.general (%p1886_p3), %s242_s16, 512, %s256_s26, %s231_s29, %s1784_s11, [#allocation9], %s1424_s10, 0  }
  0x4d PF: > { %p1425_p8 = scmp.ge.s32.totalorder %s1776_s25, 1  ;;  %p276_p9 = scmp.lt.s32.totalorder %s1776_s25, 5 }
  0x4f   : > { %p277_p12 = pnand %p1425_p8, %p276_p9 }
  0x50   : > { %s1968_s0 = sand.u32 (!%p277_p12), 1, %s1752_s19   ;;  %p2194_p2 = scmp.ne.s32.totalorder (!%p277_p12), %s2189_s7, 0 }
  0x51   : > { %280 = sbr.rel (%p277_p12) target bundleno = 669 (0x29d), region = 40  ;;  %s1426_s9 = sshll.u32 (!%p277_p12), %s1968_s0, 2 }
  0x52   : > { %s283_s30 = scalar_lea.sflag (!%p277_p12), [#allocation3], %s1968_s0  ;;  %s286_s15 = scalar_lea.vmem (!%p277_p12), [#allocation2], %s1426_s9 }
  0x58   : > { %1735 = dma.done.wait (%p2194_p2), %s283_s30, 64  }
  0x59   : > { %1737 = vsyncadd (%p2194_p2), %s283_s30, 4294967232  ;;  %s1427_s6 = sshll.u32 %s1968_s0, 5  ;;  %s292_s14 = scalar_lea.sflag [#allocation6], %s1968_s0 }
  0x5a   : > { %s295_s26 = scalar_lea.vmem [#allocation5], %s1427_s6 }
  0x5b   : > { %1739 = dma.done.wait (%p2194_p2), %s292_s14, 512  }
  0x5c   : > { %1741 = vsyncadd (%p2194_p2), %s292_s14, 4294966784  ;;  %v1785_v0 = vmov 0.0   ;;  %vm1786_vm0 = vmmov 0   ;;  %v1787_v1 = vmov 0   ;;  %v1788_v2 = vmov 0.0|0.0   ;;  %s1428_s28 = sshll.u32 %s1968_s0, 6 }
  0x5d   : > { %1475 = vmatprep.subr.mxu0 %v1785_v0  ;;  %1477 = vmatprep.mubr.msk.f32.mxu0 %vm1786_vm0, %v1785_v0  ;;  %vm334_vm1 = vcmask 261120   ;;  %vm353_vm2 = vcmask 1043456   ;;  %v329_v3 = vld [vmem:[%s295_s26] sm:$0xff]  ;;  %v330_v4 = vld [vmem:[%s295_s26 + $0x8] sm:$0xff]  ;;  %v331_v5 = vld [vmem:[%s295_s26 + $0x10] sm:$0xff]  ;;  %vm349_vm3 = vcmask 31744   ;;  %v505_v26 = vlaneseq }
  0x5e   : > { %1673 = vset.pattern.permute.xlu0 %v1787_v1  ;;  %1536 = vmatprep.subr.bf16.mxu1 %v1788_v2  ;;  %v332_v6 = vld [vmem:[%s295_s26 + $0x18] sm:$0xff]  ;;  %s1989_s7 = scalar_lea.vmem [#allocation7], %s1428_s28  ;;  %v342_v11 = vld [vmem:[%s2179_s4 + $0x8] sm:$0xff]  ;;  %vm427_vm4 = vcmask 130048   ;;  %s1789_s30 = smov 96   ;;  %vm526_vm5 = vcmask 253952  }
  0x5f   : > { %1484 = vmatprep.mubr.msk.f32.mxu1 %vm1786_vm0, %v1785_v0  ;;  %1429 = vst.msk [vmem:[%s1989_s7 + $0x20] sm:$0xff] %vm334_vm1, %v329_v3  ;;  %1430 = vst.msk [vmem:[%s1989_s7 + $0x28] sm:$0xff] %vm334_vm1, %v330_v4  ;;  %v343_v7 = vld [vmem:[%s286_s15] sm:$0xf]  ;;  %s1790_s15 = smov 112   ;;  %s1791_s6 = smov 80  }
  0x60   : > { %1431 = vst.msk [vmem:[%s1989_s7 + $0x30] sm:$0xff] %vm334_vm1, %v331_v5  ;;  %v339_v8 = vld [vmem:[%s2177_s2] sm:$0x3]  ;;  %1432 = vst.msk [vmem:[%s1989_s7 + $0x38] sm:$0xff] %vm334_vm1, %v332_v6  ;;  %1476 = vmatpush3.msk.msra.mxu0 %vm353_vm2, %v343_v7  ;;  %s1792_s14 = smov 64   ;;  %s1793_s26 = smov 48  }
  0x61   : > { %v340_v9 = vld [vmem:[%s2178_s3] sm:$0x3]  ;;  %1478 = vmatmul.mubr.msk.f32.vlgmr.msra.gmra.mrb[0].mxu0 %vm349_vm3, %v339_v8  ;;  %1539 = vmatprep.subr.bf16.mxu0 %v1788_v2  ;;  %s1794_s28 = smov 32   ;;  %s1795_s13 = smov 16   ;;  %v1796_v24 = vmov 1966171168  }
  0x62   : > { %v341_v10 = vld [vmem:[%s2179_s4] sm:$0xff]  ;;  %346 = vperm.xlu0 %1673, %v340_v9   ;;  %1491 = vmatprep.mubr.msk.f32.mxu0 %vm1786_vm0, %v1785_v0  ;;  %v503_v25 = vunpack.c.l.s4 %v1796_v24  ;;  %v506_v28 = vshrl.u32 %v505_v26, 7  ;;  %s1253_s17 = scalar_lea.sflag [#allocation4], %s1968_s0 }
  0x63   : > { %v1537_v12 = vpack.c.bf16 %v342_v11, %v341_v10 }
  0x64   : > { %v504_v27 = vunpack.c.0.s8 %v503_v25 }
  0x65   : > { %1538 = vmatpush3.bf16.msra.mxu1 %v1537_v12  ;;  %1541 = vmatpush3.bf16.msra.mxu0 %v1537_v12 }
  0x66   : > { %1542 = vmatprep.subr.bf16.mxu1 %v1788_v2  ;;  %1545 = vmatprep.subr.bf16.mxu0 %v1788_v2  ;;  %v2036_v29 = vsub.s32 %v504_v27, %v506_v28 }
  0xe1   : > { %v347_v13 = vpop.permute.xlu0 %346 }
 0x134   : > { %v423_v14 = vpop.f32.mrb[0].mxu0 }
 0x135   : > { %v424_v15 = vadd.f32 %v423_v14, %v347_v13  ;;  %v1479_v16 = vpop.f32.mrb[1].mxu0 }
 0x137   : > { %634 = vrot.lane.b32.xlu1 %v424_v15, %s1789_s30  ;;  %531 = vrot.lane.b32.xlu0 %v424_v15, %s1790_s15 }
 0x138   : > { %1485 = vmatmul.mubr.msk.f32.vlgmr.msra.gmra.mrb[0].mxu1 %vm427_vm4, %v424_v15 }
 0x139   : > { %1544 = vmatpush3.bf16.msra.mxu1 %v1537_v12  ;;  %1498 = vmatprep.mubr.msk.f32.mxu1 %vm1786_vm0, %v1785_v0 }
 0x13a   : > { %1548 = vmatprep.subr.bf16.mxu1 %v1788_v2 }
 0x13b   : > { %737 = vrot.lane.b32.xlu1 %v424_v15, %s1791_s6  ;;  %840 = vrot.lane.b32.xlu0 %v424_v15, %s1792_s14 }
 0x13f   : > { %943 = vrot.lane.b32.xlu1 %v424_v15, %s1793_s26  ;;  %1046 = vrot.lane.b32.xlu0 %v424_v15, %s1794_s28 }
 0x143   : > { %1149 = vrot.lane.b32.xlu1 %v424_v15, %s1795_s13 }
 0x1a9   : > { %v635_v17 = vpop.permute.xlu1 %634  ;;  %v532_v18 = vpop.permute.xlu0 %531 }
 0x1aa   : > { %1492 = vmatmul.mubr.msk.f32.vlgmr.msra.gmra.mrb[2].mxu0 %vm427_vm4, %v532_v18  ;;  %1499 = vmatmul.mubr.msk.f32.vlgmr.msra.gmra.mrb[2].mxu1 %vm427_vm4, %v635_v17 }
 0x1ab   : > { %1547 = vmatpush3.bf16.msra.mxu0 %v1537_v12  ;;  %1550 = vmatpush3.bf16.msra.mxu1 %v1537_v12 }
 0x1ac   : > { %1505 = vmatprep.mubr.msk.f32.mxu0 %vm1786_vm0, %v1785_v0  ;;  %1551 = vmatprep.subr.bf16.mxu0 %v1788_v2 }
 0x1ad   : > { %v738_v19 = vpop.permute.xlu1 %737  ;;  %v841_v20 = vpop.permute.xlu0 %840  ;;  %1512 = vmatprep.mubr.msk.f32.mxu1 %vm1786_vm0, %v1785_v0  ;;  %1554 = vmatprep.subr.bf16.mxu1 %v1788_v2 }
 0x1ae   : > { %1506 = vmatmul.mubr.msk.f32.vlgmr.msra.gmra.mrb[4].mxu0 %vm427_vm4, %v738_v19  ;;  %1513 = vmatmul.mubr.msk.f32.vlgmr.msra.gmra.mrb[4].mxu1 %vm427_vm4, %v841_v20 }
 0x1af   : > { %1553 = vmatpush3.bf16.msra.mxu0 %v1537_v12  ;;  %1556 = vmatpush3.bf16.msra.mxu1 %v1537_v12 }
 0x1b0   : > { %1519 = vmatprep.mubr.msk.f32.mxu0 %vm1786_vm0, %v1785_v0  ;;  %1557 = vmatprep.subr.bf16.mxu0 %v1788_v2 }
 0x1b1   : > { %v944_v21 = vpop.permute.xlu1 %943  ;;  %v1047_v22 = vpop.permute.xlu0 %1046  ;;  %1526 = vmatprep.mubr.msk.f32.mxu1 %vm1786_vm0, %v1785_v0 }
 0x1b2   : > { %1520 = vmatmul.mubr.msk.f32.vlgmr.msra.gmra.mrb[6].mxu0 %vm427_vm4, %v944_v21  ;;  %1527 = vmatmul.mubr.msk.f32.vlgmr.msra.gmra.mrb[6].mxu1 %vm427_vm4, %v1047_v22 }
 0x1b3   : > { %1559 = vmatpush3.bf16.msra.mxu0 %v1537_v12  ;;  %1533 = vmatprep.mubr.msk.f32.mxu0 %vm1786_vm0, %v1785_v0 }
 0x1b5   : > { %v1150_v23 = vpop.permute.xlu1 %1149 }
 0x1b6   : > { %1534 = vmatmul.mubr.msk.f32.vlgmr.msra.gmra.mrb[8].mxu0 %vm427_vm4, %v1150_v23 }
 0x20b   : > { %v497_v30 = vpop.f32.mrb[0].mxu1 }
 0x20c   : > { %v508_v31 = vrot.slane %v497_v30, %v2036_v29  ;;  %v1486_v32 = vpop.f32.mrb[1].mxu1 }
 0x20e   : > { %v509_v33 = vcombine.high %v508_v31, %v508_v31  ;;  %v516_v34 = vrot.slane %v508_v31, %v2036_v29 }
 0x210   : > { %v523_v35 = vrot.slane %v509_v33, %v2036_v29  ;;  %527 = vst.msk [vmem:[%s1989_s7] sm:$0x1] %vm526_vm5, %v516_v34  ;;  %529 = vst.msk [vmem:[%s1989_s7 + $0x1] sm:$0x1] %vm526_vm5, %v516_v34 }
 0x212   : > { %528 = vst.msk [vmem:[%s1989_s7 + $0x10] sm:$0x1] %vm526_vm5, %v523_v35  ;;  %530 = vst.msk [vmem:[%s1989_s7 + $0x11] sm:$0x1] %vm526_vm5, %v523_v35 }
 0x27d   : > { %v601_v36 = vpop.f32.mrb[2].mxu0  ;;  %v704_v37 = vpop.f32.mrb[2].mxu1 }
 0x27e   : > { %v612_v38 = vrot.slane %v601_v36, %v2036_v29  ;;  %v715_v39 = vrot.slane %v704_v37, %v2036_v29  ;;  %v1493_v40 = vpop.f32.mrb[3].mxu0  ;;  %v1500_v41 = vpop.f32.mrb[3].mxu1 }
 0x280   : > { %v613_v42 = vcombine.high %v612_v38, %v612_v38  ;;  %v620_v43 = vrot.slane %v612_v38, %v2036_v29  ;;  %v716_v44 = vcombine.high %v715_v39, %v715_v39  ;;  %v723_v45 = vrot.slane %v715_v39, %v2036_v29 }
 0x281   : > { %v807_v46 = vpop.f32.mrb[4].mxu0  ;;  %v910_v47 = vpop.f32.mrb[4].mxu1 }
 0x282   : > { %v627_v48 = vrot.slane %v613_v42, %v2036_v29  ;;  %630 = vst.msk [vmem:[%s1989_s7 + $0x2] sm:$0x1] %vm526_vm5, %v620_v43  ;;  %632 = vst.msk [vmem:[%s1989_s7 + $0x3] sm:$0x1] %vm526_vm5, %v620_v43  ;;  %v730_v49 = vrot.slane %v716_v44, %v2036_v29  ;;  %v818_v50 = vrot.slane %v807_v46, %v2036_v29  ;;  %v1507_v52 = vpop.f32.mrb[5].mxu0  ;;  %v1514_v53 = vpop.f32.mrb[5].mxu1 }
 0x283   : > { %733 = vst.msk [vmem:[%s1989_s7 + $0x4] sm:$0x1] %vm526_vm5, %v723_v45  ;;  %735 = vst.msk [vmem:[%s1989_s7 + $0x5] sm:$0x1] %vm526_vm5, %v723_v45  ;;  %v921_v51 = vrot.slane %v910_v47, %v2036_v29 }
 0x284   : > { %631 = vst.msk [vmem:[%s1989_s7 + $0x12] sm:$0x1] %vm526_vm5, %v627_v48  ;;  %633 = vst.msk [vmem:[%s1989_s7 + $0x13] sm:$0x1] %vm526_vm5, %v627_v48  ;;  %v819_v54 = vcombine.high %v818_v50, %v818_v50  ;;  %v826_v55 = vrot.slane %v818_v50, %v2036_v29 }
 0x285   : > { %734 = vst.msk [vmem:[%s1989_s7 + $0x14] sm:$0x1] %vm526_vm5, %v730_v49  ;;  %736 = vst.msk [vmem:[%s1989_s7 + $0x15] sm:$0x1] %vm526_vm5, %v730_v49  ;;  %v922_v56 = vcombine.high %v921_v51, %v921_v51  ;;  %v929_v57 = vrot.slane %v921_v51, %v2036_v29  ;;  %v1013_v58 = vpop.f32.mrb[6].mxu0  ;;  %v1116_v59 = vpop.f32.mrb[6].mxu1 }
 0x286   : > { %v833_v60 = vrot.slane %v819_v54, %v2036_v29  ;;  %836 = vst.msk [vmem:[%s1989_s7 + $0x6] sm:$0x1] %vm526_vm5, %v826_v55  ;;  %838 = vst.msk [vmem:[%s1989_s7 + $0x7] sm:$0x1] %vm526_vm5, %v826_v55  ;;  %v1024_v62 = vrot.slane %v1013_v58, %v2036_v29  ;;  %v1127_v63 = vrot.slane %v1116_v59, %v2036_v29  ;;  %v1521_v0 = vpop.f32.mrb[7].mxu0  ;;  %v1528_v1 = vpop.f32.mrb[7].mxu1 }
 0x287   : > { %v936_v61 = vrot.slane %v922_v56, %v2036_v29  ;;  %939 = vst.msk [vmem:[%s1989_s7 + $0x8] sm:$0x1] %vm526_vm5, %v929_v57  ;;  %941 = vst.msk [vmem:[%s1989_s7 + $0x9] sm:$0x1] %vm526_vm5, %v929_v57 }
 0x288   : > { %837 = vst.msk [vmem:[%s1989_s7 + $0x16] sm:$0x1] %vm526_vm5, %v833_v60  ;;  %839 = vst.msk [vmem:[%s1989_s7 + $0x17] sm:$0x1] %vm526_vm5, %v833_v60  ;;  %v1025_v2 = vcombine.high %v1024_v62, %v1024_v62  ;;  %v1032_v3 = vrot.slane %v1024_v62, %v2036_v29  ;;  %v1128_v4 = vcombine.high %v1127_v63, %v1127_v63 }
 0x289   : > { %940 = vst.msk [vmem:[%s1989_s7 + $0x18] sm:$0x1] %vm526_vm5, %v936_v61  ;;  %942 = vst.msk [vmem:[%s1989_s7 + $0x19] sm:$0x1] %vm526_vm5, %v936_v61  ;;  %v1135_v5 = vrot.slane %v1127_v63, %v2036_v29  ;;  %v1219_v6 = vpop.f32.mrb[8].mxu0 }
 0x28a   : > { %v1039_v7 = vrot.slane %v1025_v2, %v2036_v29  ;;  %1042 = vst.msk [vmem:[%s1989_s7 + $0xa] sm:$0x1] %vm526_vm5, %v1032_v3  ;;  %1044 = vst.msk [vmem:[%s1989_s7 + $0xb] sm:$0x1] %vm526_vm5, %v1032_v3  ;;  %v1142_v8 = vrot.slane %v1128_v4, %v2036_v29  ;;  %v1230_v9 = vrot.slane %v1219_v6, %v2036_v29  ;;  %v1535_v10 = vpop.f32.mrb[9].mxu0 }
 0x28b   : > { %1145 = vst.msk [vmem:[%s1989_s7 + $0xc] sm:$0x1] %vm526_vm5, %v1135_v5  ;;  %1147 = vst.msk [vmem:[%s1989_s7 + $0xd] sm:$0x1] %vm526_vm5, %v1135_v5 }
 0x28c   : > { %1043 = vst.msk [vmem:[%s1989_s7 + $0x1a] sm:$0x1] %vm526_vm5, %v1039_v7  ;;  %1045 = vst.msk [vmem:[%s1989_s7 + $0x1b] sm:$0x1] %vm526_vm5, %v1039_v7  ;;  %v1231_v11 = vcombine.high %v1230_v9, %v1230_v9  ;;  %v1238_v12 = vrot.slane %v1230_v9, %v2036_v29 }
 0x28d   : > { %1146 = vst.msk [vmem:[%s1989_s7 + $0x1c] sm:$0x1] %vm526_vm5, %v1142_v8  ;;  %1148 = vst.msk [vmem:[%s1989_s7 + $0x1d] sm:$0x1] %vm526_vm5, %v1142_v8 }
 0x28e   : > { %v1245_v13 = vrot.slane %v1231_v11, %v2036_v29  ;;  %1248 = vst.msk [vmem:[%s1989_s7 + $0xe] sm:$0x1] %vm526_vm5, %v1238_v12  ;;  %1250 = vst.msk [vmem:[%s1989_s7 + $0xf] sm:$0x1] %vm526_vm5, %v1238_v12 }
 0x290   : > { %1249 = vst.msk [vmem:[%s1989_s7 + $0x1e] sm:$0x1] %vm526_vm5, %v1245_v13  ;;  %1251 = vst.msk [vmem:[%s1989_s7 + $0x1f] sm:$0x1] %vm526_vm5, %v1245_v13 }
 0x291   : > { %s1444_s16 = sshll.u32 %s1760_s21, 1  ;;  %s1445_s27 = sshll.u32 %s1764_s22, 4 }
 0x292   : > { %s1265_s10 = sadd.s32 %s1445_s27, %s1444_s16  ;;  %s1284_s29 = sshll.u32 %s1989_s7, 4  ;;  %s1285_s29 = int_to_ptr.vmem [resolvable:$true] %s1284_s29 }
 0x293   : > { %s1446_s11 = sshll.u32 %s1265_s10, 7  ;;  %s1797_s15 = smov 256  }
 0x294   : > { %s1267_s0 = scalar_lea.hbm %s2180_s5, %s1446_s11  ;;  %p2195_p3 = scmp.ne.s32.totalorder %s2190_s8, 0 }
 0x295   : > { %s1798_s6 = smov 512   ;;  %s1799_s14 = smov 2  }
 0x296   : > { %1571 = sst [smem:[#allocation11]] (%p2195_p3), %s1797_s15  ;;  %s1800_s21 = smov 128  }
 0x297   : > { %1572 = sst [smem:[#allocation11 + $0x1]] (%p2195_p3), %s1798_s6  ;;  %s1801_s22 = smov 8  }
 0x298   : > { %1573 = sst [smem:[#allocation11 + $0x2]] (%p2195_p3), %s1799_s14  ;;  %s1802_s7 = smov [#allocation10]  }
 0x299   : > { %1574 = sst [smem:[#allocation11 + $0x3]] (%p2195_p3), %s1800_s21  ;;  %s1803_s26 = smov 0  }
 0x29a   : > { %1575 = sst [smem:[#allocation11 + $0x4]] (%p2195_p3), %s1800_s21 }
 0x29b   : > { %1576 = sst [smem:[#allocation11 + $0x5]] (%p2195_p3), %s1801_s22 }
 0x29c   : > { %1577 = dma.general (%p2195_p3), %s1285_s29, 1024, %s1267_s0, %s1253_s17, %s1802_s7, [#allocation11], %s1803_s26, 0  }
 0x29d PF: > { %p1583_p5 = scmp.ge.s32.totalorder %s1776_s25, 2  ;;  %s1312_s28 = sand.u32 1, %s1748_s18  }
 0x29e   : > { %p2196_p6 = scmp.ne.s32.totalorder %s2191_s12, 0  ;;  %s1313_s13 = scalar_lea.sflag [#allocation4], %s1312_s28 }
 0x2a0   : > { %p1580_p7 = pnand %p1583_p5, %p2196_p6 }
 0x2a2   : > { %1743 = dma.done.wait (!%p1580_p7), %s1313_s13, 1024  }
 0x2a3   : > { %1745 = vsyncadd (!%p1580_p7), %s1313_s13, 4294966272  ;;  %s24_s25 = sadd.s32 1, %s1776_s25   ;;  %s2197_s16 = sld [smem:[#allocation18_spill]] }
 0x2a4   : > { %p21_p10 = scmp.ge.s32.totalorder %s24_s25, 6   ;;  %s2198_s8 = sld [smem:[#allocation16_spill]] }
 0x2a5   : > { %s2199_s17 = sld [smem:[#allocation17_spill]]  ;;  %s2200_s18 = smov %s1752_s19 }
 0x2a6   : > { %s2201_s19 = smov %s1756_s20  ;;  %s2203_s21 = smov %s1768_s23 }
 0x2a7   : > { %s2204_s22 = smov %s1772_s24  ;;  %23 = sbr.rel (!%p21_p10) target bundleno = 11 (0xb), region = 109 }
 0x2a9   : > { %s2202_s20 = smov %s2197_s16 }
 0x2aa   : > { %s2205_s23 = smov %s2198_s8 }
 0x2ab   : > { %s2206_s24 = smov %s2199_s17 }
 0x2ae   :  { %1318 = vsyncpa [#allocation3], 1 }
 0x2af   :  { %1320 = vsyncpa [#allocation3 + $0x1], 1 }
 0x2b0   :  { %1321 = vsyncpa [#allocation6], 1 }
 0x2b1   :  { %1323 = vsyncpa [#allocation6 + $0x1], 1 }
 0x2b2   :  { %1324 = vsyncpa [#allocation4], 1 }
 0x2b3   :  { %1326 = vsyncpa [#allocation4 + $0x1], 1 }

</bundles_post_ra>
